<compile_context>
chip_gen: v7x
topology: tpu7x:2x2x1
jax: 0.10.0
libtpu: 0.0.40
codegen_flags: <defaults>
</compile_context>

<pallas_src>
import jax
import jax.numpy as jnp
from jax import lax
from jax.experimental import pallas as pl
from jax.experimental.pallas import tpu as pltpu

LN_EPS = 1e-5


def _round_up(n, m):
    return ((n + m - 1) // m) * m


def _vmem_capacity_bytes():
    try:
        info = pltpu.get_tpu_info()
        cap = getattr(info, "vmem_capacity_bytes", None)
        if cap:
            return int(cap)
    except Exception:
        pass
    return 64 << 20  # conservative: v7x physical VMEM per TensorCore


def _make_lm_head_kernel(ln_once):
    def kernel(x_ref, g_ref, b_ref, w_ref, o_ref, y_ref):
        # x_ref: (tm, H)   g_ref/b_ref: (1, H)   w_ref: (H, tn)   o_ref: (tm, tn)
        # y_ref: (tm, H) VMEM scratch holding the LayerNorm output in compute dtype.
        def _layernorm():
            x = x_ref[...].astype(jnp.float32)
            mean = jnp.mean(x, axis=-1, keepdims=True)
            centered = x - mean
            # Two-pass variance: avoids E[x^2]-E[x]^2 cancellation for large means.
            var = jnp.mean(centered * centered, axis=-1, keepdims=True)
            y = centered * lax.rsqrt(var + LN_EPS)
            y = y * g_ref[...].astype(jnp.float32) + b_ref[...].astype(jnp.float32)
            y_ref[...] = y.astype(y_ref.dtype)

        if ln_once:
            # Vocab axis is inner & "arbitrary": LayerNorm runs once per row tile.
            pl.when(pl.program_id(1) == 0)(_layernorm)
        else:
            # Decode path: vocab axis is megacore-parallel, so each core must
            # compute the (tiny) LayerNorm itself every step.
            _layernorm()

        # Plain (tm,H) x (H,tn) contraction — weight already pre-transposed, so
        # the MXU consumes it directly with no in-kernel transpose.
        o_ref[...] = jnp.dot(
            y_ref[...], w_ref[...], preferred_element_type=jnp.float32
        ).astype(o_ref.dtype)

    return kernel


def gpt_lm_head(x, gamma, beta, embed_out_w, *, tm=None, tn=512,
                compute_dtype=jnp.bfloat16, out_dtype=None):
    """x: [B, S, H]; gamma/beta: [H]; embed_out_w: [V, H] (PyTorch Linear layout).

    compute_dtype=jnp.float32 is the high-precision escape hatch (matches the
    PyTorch f32 LN -> f32 matmul reference more tightly). out_dtype can be set
    to bf16 when downstream softmax / fused cross-entropy accepts it to halve
    the logits HBM write.
    """
    B, S, H = x.shape
    V = embed_out_w.shape[0]
    M = B * S
    out_dtype = x.dtype if out_dtype is None else out_dtype

    isz_c = jnp.dtype(compute_dtype).itemsize
    isz_o = jnp.dtype(out_dtype).itemsize

    # Lane-dense output tile; clamp to the (padded) vocab size.
    tn = min(_round_up(tn, 128), _round_up(V, 128))

    phys_vmem = _vmem_capacity_bytes()
    vmem_budget = max(phys_vmem - (12 << 20), 16 << 20)  # headroom for compiler scratch

    def _vmem_est(tm_):
        # Double-buffered inputs/outputs + LN scratch.
        return (2 * (tm_ * H * isz_c          # x tile
                     + 2 * H * 4              # gamma + beta
                     + H * tn * isz_c         # weight tile
                     + tm_ * tn * isz_o)      # output tile
                + tm_ * H * isz_c)            # LN scratch

    if tm is None:
        # Largest row tile that fits the VMEM budget -> maximal weight reuse.
        # TODO(synk): on v5e (ridge ~240 FLOPs/B) tm~256-384 already saturates the
        # MXU; add a generation check to keep tm modest there.
        tm = 8
        for cand in (1024, 768, 512, 384, 256, 128, 64, 32, 16, 8):
            if _vmem_est(cand) <= vmem_budget:
                tm = cand
                break
    tm = _round_up(tm, 8)
    tm = min(tm, _round_up(M, 8))

    M_pad = _round_up(M, tm)
    V_pad = _round_up(V, tn)

    # Activations in compute dtype (halves x HBM traffic & VMEM residency).
    x2 = x.reshape(M, H).astype(compute_dtype)
    if M_pad != M:
        x2 = jnp.pad(x2, ((0, M_pad - M), (0, 0)))
    g2 = gamma.reshape(1, H).astype(jnp.float32)
    b2 = beta.reshape(1, H).astype(jnp.float32)
    # One-time (cacheable under jit) pre-transpose [V,H] -> [H,V] so the kernel
    # runs a standard (K,N) contraction with no per-tile XLU transpose.
    w = embed_out_w.astype(compute_dtype).T
    if V_pad != V:
        w = jnp.pad(w, ((0, 0), (0, V_pad - V)))

    row_tiles = M_pad // tm
    vocab_tiles = V_pad // tn

    # Megacore mapping: rows parallel for prefill; vocab parallel for decode
    # (single row tile), in which case LN must run on every step.
    decode_path = (row_tiles == 1 and vocab_tiles > 1)
    ln_once = not decode_path
    dim_sem = ("arbitrary", "parallel") if decode_path else ("parallel", "arbitrary")

    vmem_est = _vmem_est(tm)
    vmem_limit = int(min(phys_vmem, max(32 << 20, vmem_est + (8 << 20))))

    cost = pl.CostEstimate(
        flops=2 * M_pad * V_pad * H + 8 * M_pad * H,
        transcendentals=M_pad,  # one rsqrt per row
        bytes_accessed=(M_pad * H * isz_c
                        + row_tiles * V_pad * H * isz_c  # weight re-streamed per row tile
                        + M_pad * V_pad * isz_o
                        + 2 * H * 4),
    )

    out = pl.pallas_call(
        _make_lm_head_kernel(ln_once),
        out_shape=jax.ShapeDtypeStruct((M_pad, V_pad), out_dtype),
        grid_spec=pltpu.PrefetchScalarGridSpec(
            num_scalar_prefetch=0,
            grid=(row_tiles, vocab_tiles),  # vocab inner -> LN scratch reuse
            in_specs=[
                pl.BlockSpec((tm, H), lambda i, j: (i, 0)),   # activation rows
                pl.BlockSpec((1, H), lambda i, j: (0, 0)),    # gamma
                pl.BlockSpec((1, H), lambda i, j: (0, 0)),    # beta
                pl.BlockSpec((H, tn), lambda i, j: (0, j)),   # weight cols [H, V]
            ],
            out_specs=pl.BlockSpec((tm, tn), lambda i, j: (i, j)),
            scratch_shapes=[pltpu.VMEM((tm, H), compute_dtype)],
        ),
        compiler_params=pltpu.CompilerParams(
            dimension_semantics=dim_sem,
            vmem_limit_bytes=vmem_limit,
        ),
        cost_estimate=cost,
    )(x2, g2, b2, w)

    return out[:M, :V].reshape(B, S, V)


def reference(x, gamma, beta, embed_out_w):
    xf = x.astype(jnp.float32)
    mean = jnp.mean(xf, axis=-1, keepdims=True)
    var = jnp.mean((xf - mean) ** 2, axis=-1, keepdims=True)
    xn = (xf - mean) * lax.rsqrt(var + LN_EPS)
    y = xn * gamma.astype(jnp.float32) + beta.astype(jnp.float32)
    return jnp.einsum("bsh,vh->bsv", y, embed_out_w.astype(jnp.float32),
                      precision=lax.Precision.HIGHEST)


if __name__ == "__main__":
    B, S, H = 2, 8, 32
    key = jax.random.PRNGKey(0)
    kx, kg, kb, kw = jax.random.split(key, 4)
    gamma = 1.0 + 0.1 * jax.random.normal(kg, (H,), dtype=jnp.float32)
    beta = 0.1 * jax.random.normal(kb, (H,), dtype=jnp.float32)

    # Case 1: V not a multiple of 128 (exercises vocab padding), single-tile grid.
    V1 = 250
    x1 = jax.random.normal(kx, (B, S, H), dtype=jnp.float32)
    w1 = jax.random.normal(kw, (V1, H), dtype=jnp.float32) * (1.0 / H ** 0.5)
    ref1 = reference(x1, gamma, beta, w1)

    out_f32 = jax.block_until_ready(
        gpt_lm_head(x1, gamma, beta, w1, compute_dtype=jnp.float32))
    assert out_f32.shape == (B, S, V1), out_f32.shape
    assert jnp.allclose(out_f32, ref1, atol=1e-3, rtol=1e-3), "f32 path mismatch"

    out_bf16 = jax.block_until_ready(gpt_lm_head(x1, gamma, beta, w1))
    assert out_bf16.shape == (B, S, V1), out_bf16.shape
    assert jnp.allclose(out_bf16, ref1, atol=5e-2, rtol=5e-2), "bf16 path mismatch"

    # Case 2: multi-tile grid (2 row tiles x 2 vocab tiles) -> LN-once scratch reuse.
    V2 = 520
    w2 = jax.random.normal(kw, (V2, H), dtype=jnp.float32) * (1.0 / H ** 0.5)
    ref2 = reference(x1, gamma, beta, w2)
    out2 = jax.block_until_ready(
        gpt_lm_head(x1, gamma, beta, w2, tm=8, tn=512, compute_dtype=jnp.float32))
    assert out2.shape == (B, S, V2), out2.shape
    assert jnp.allclose(out2, ref2, atol=1e-3, rtol=1e-3), "multi-tile path mismatch"

    # Case 3: decode-shaped (1 row tile, 2 vocab tiles) -> vocab-parallel megacore
    # path with per-step LayerNorm.
    x3 = jax.random.normal(kx, (1, 4, H), dtype=jnp.float32)
    ref3 = reference(x3, gamma, beta, w2)
    out3 = jax.block_until_ready(
        gpt_lm_head(x3, gamma, beta, w2, tn=512, compute_dtype=jnp.float32))
    assert out3.shape == (1, 4, V2), out3.shape
    assert jnp.allclose(out3, ref3, atol=1e-3, rtol=1e-3), "decode path mismatch"

    print("KERNEL_OK")
</pallas_src>

<mosaic_0001>
module attributes {stable_mosaic.version = 11 : i64} {
  func.func @kernel(%arg0: i32, %arg1: i32, %arg2: memref<16x32xf32, #tpu.memory_space<vmem>>, %arg3: memref<1x32xf32, #tpu.memory_space<vmem>>, %arg4: memref<1x32xf32, #tpu.memory_space<vmem>>, %arg5: memref<32x256xf32, #tpu.memory_space<vmem>>, %arg6: memref<16x256xf32, #tpu.memory_space<vmem>>, %arg7: memref<16x32xf32, #tpu.memory_space<vmem>>) attributes {dimension_semantics = [#tpu.dimension_semantics<parallel>, #tpu.dimension_semantics<arbitrary>], iteration_bounds = array<i64: 1, 1>, scalar_prefetch = 0 : i64, scratch_operands = 1 : i64, tpu.core_type = #tpu.core_type<tc>, window_params = [{transform_indices = @transform_0, window_bounds = array<i64: 16, 32>}, {pipeline_mode = #tpu.pipeline_mode<synchronous>, transform_indices = @transform_1, window_bounds = array<i64: 1, 32>}, {pipeline_mode = #tpu.pipeline_mode<synchronous>, transform_indices = @transform_2, window_bounds = array<i64: 1, 32>}, {transform_indices = @transform_3, window_bounds = array<i64: 32, 256>}, {transform_indices = @transform_4, window_bounds = array<i64: 16, 256>}]} {
    %c0_i32 = arith.constant 0 : i32
    %0 = arith.cmpi eq, %arg1, %c0_i32 : i32
    %1 = arith.extui %0 : i1 to i32
    %c0_i32_0 = arith.constant 0 : i32
    %2 = arith.cmpi ne, %1, %c0_i32_0 : i32
    scf.if %2 {
      %c0_6 = arith.constant 0 : index
      %c0_7 = arith.constant 0 : index
      %7 = vector.load %arg2[%c0_6, %c0_7] : memref<16x32xf32, #tpu.memory_space<vmem>>, vector<16x32xf32>
      %cst_8 = arith.constant dense<0.000000e+00> : vector<16xf32>
      %8 = vector.multi_reduction <add>, %7, %cst_8 [1] : vector<16x32xf32> to vector<16xf32>
      %9 = vector.shape_cast %8 : vector<16xf32> to vector<16x1xf32>
      %cst_9 = arith.constant 3.200000e+01 : f32
      %10 = vector.broadcast %cst_9 : f32 to vector<16x1xf32>
      %11 = arith.divf %9, %10 : vector<16x1xf32>
      %12 = vector.broadcast %11 : vector<16x1xf32> to vector<16x32xf32>
      %13 = arith.subf %7, %12 : vector<16x32xf32>
      %14 = arith.mulf %13, %13 : vector<16x32xf32>
      %cst_10 = arith.constant dense<0.000000e+00> : vector<16xf32>
      %15 = vector.multi_reduction <add>, %14, %cst_10 [1] : vector<16x32xf32> to vector<16xf32>
      %16 = vector.shape_cast %15 : vector<16xf32> to vector<16x1xf32>
      %cst_11 = arith.constant 3.200000e+01 : f32
      %17 = vector.broadcast %cst_11 : f32 to vector<16x1xf32>
      %18 = arith.divf %16, %17 : vector<16x1xf32>
      %cst_12 = arith.constant 9.99999974E-6 : f32
      %19 = vector.broadcast %cst_12 : f32 to vector<16x1xf32>
      %20 = arith.addf %18, %19 : vector<16x1xf32>
      %21 = math.rsqrt %20 : vector<16x1xf32>
      %22 = vector.broadcast %21 : vector<16x1xf32> to vector<16x32xf32>
      %23 = arith.mulf %13, %22 : vector<16x32xf32>
      %c0_13 = arith.constant 0 : index
      %c0_14 = arith.constant 0 : index
      %24 = vector.load %arg3[%c0_13, %c0_14] : memref<1x32xf32, #tpu.memory_space<vmem>>, vector<1x32xf32>
      %25 = vector.broadcast %24 : vector<1x32xf32> to vector<16x32xf32>
      %26 = arith.mulf %23, %25 : vector<16x32xf32>
      %c0_15 = arith.constant 0 : index
      %c0_16 = arith.constant 0 : index
      %27 = vector.load %arg4[%c0_15, %c0_16] : memref<1x32xf32, #tpu.memory_space<vmem>>, vector<1x32xf32>
      %28 = vector.broadcast %27 : vector<1x32xf32> to vector<16x32xf32>
      %29 = arith.addf %26, %28 : vector<16x32xf32>
      %c0_17 = arith.constant 0 : index
      %c0_18 = arith.constant 0 : index
      %30 = vector.load %arg7[%c0_17, %c0_18] : memref<16x32xf32, #tpu.memory_space<vmem>>, vector<16x32xf32>
      tpu.vector_store %arg7[%c0_17, %c0_18], %29 {strides = array<i32>} : memref<16x32xf32, #tpu.memory_space<vmem>>, vector<16x32xf32>,
    } else {
    }
    %c0 = arith.constant 0 : index
    %c0_1 = arith.constant 0 : index
    %3 = vector.load %arg7[%c0, %c0_1] : memref<16x32xf32, #tpu.memory_space<vmem>>, vector<16x32xf32>
    %c0_2 = arith.constant 0 : index
    %c0_3 = arith.constant 0 : index
    %4 = vector.load %arg5[%c0_2, %c0_3] : memref<32x256xf32, #tpu.memory_space<vmem>>, vector<32x256xf32>
    %cst = arith.constant dense<0.000000e+00> : vector<16x256xf32>
    %5 = tpu.matmul %3, %4, %cst {dimension_numbers = #tpu.dot_dimension_numbers<[1], [0], [0], [1], [0, 0, 1, 1], [], []>} : vector<16x32xf32>, vector<32x256xf32>, vector<16x256xf32> -> vector<16x256xf32>
    %c0_4 = arith.constant 0 : index
    %c0_5 = arith.constant 0 : index
    %6 = vector.load %arg6[%c0_4, %c0_5] : memref<16x256xf32, #tpu.memory_space<vmem>>, vector<16x256xf32>
    tpu.vector_store %arg6[%c0_4, %c0_5], %5 {strides = array<i32>} : memref<16x256xf32, #tpu.memory_space<vmem>>, vector<16x256xf32>,
    return
  }
  func.func @transform_0(%arg0: i32, %arg1: i32) -> (i32, i32) {
    %c0_i32 = arith.constant 0 : i32
    %c0_i32_0 = arith.constant 0 : i32
    return %arg0, %c0_i32 : i32, i32
  }
  func.func @transform_1(%arg0: i32, %arg1: i32) -> (i32, i32) {
    %c0_i32 = arith.constant 0 : i32
    %c0_i32_0 = arith.constant 0 : i32
    %c0_i32_1 = arith.constant 0 : i32
    return %c0_i32, %c0_i32_0 : i32, i32
  }
  func.func @transform_2(%arg0: i32, %arg1: i32) -> (i32, i32) {
    %c0_i32 = arith.constant 0 : i32
    %c0_i32_0 = arith.constant 0 : i32
    %c0_i32_1 = arith.constant 0 : i32
    return %c0_i32, %c0_i32_0 : i32, i32
  }
  func.func @transform_3(%arg0: i32, %arg1: i32) -> (i32, i32) {
    %c0_i32 = arith.constant 0 : i32
    %c0_i32_0 = arith.constant 0 : i32
    return %c0_i32, %arg1 : i32, i32
  }
  func.func @transform_4(%arg0: i32, %arg1: i32) -> (i32, i32) {
    %c0_i32 = arith.constant 0 : i32
    return %arg0, %arg1 : i32, i32
  }
}

</mosaic_0001>

<bundles_post_ra>
// kernel: tpu_custom_call.1
= control target key start
LH: loop header
LB: loop body
LE: loop exit
PB: predicated region body
PF: predicated region fallthrough
CT: control target
= control target key end

     0   :  { %9 = vsyncpa [#allocation4], 0  ;;  %s405_s0 = inlined_call_operand.hbm [shape: f32[16,32], index: 0, kind: input, shape index: {}]   ;;  %s406_s1 = inlined_call_operand.vmem [shape: f32[1,32], index: 1, kind: input, shape index: {}]   ;;  %s407_s2 = inlined_call_operand.vmem [shape: f32[1,32], index: 2, kind: input, shape index: {}]   ;;  %s408_s3 = inlined_call_operand.hbm [shape: f32[32,256], index: 3, kind: input, shape index: {}]   ;;  %s409_s4 = inlined_call_operand.hbm [shape: f32[16,256], index: 4, kind: output, shape index: {}]  }
   0x1   :  { %10 = vsyncpa [#allocation7], 0 }
   0x2   :  { %11 = vsyncpa [#allocation5], 0  ;;  %s316_s15 = smov [#allocation3]   ;;  %s244_s19 = scalar_lea.hbm %s405_s0, 256 }
   0x3   :  { %s17_s16 = sshll.u32 %s316_s15, 4  ;;  %p245_p0 = scmp.ne.s32.totalorder %s405_s0, %s244_s19  ;;  %s18_s16 = int_to_ptr.vmem [resolvable:$true] %s17_s16 }
   0x4   :  { %p248_p1 = scmp.lt.u32.totalorder %s244_s19, %s405_s0 }
   0x6   :  { %p250_p2 = pnand %p248_p1, %p245_p0 }
   0x8   :  { %253 = shalt.err (!%p250_p2)
}
   0x9   :  { %s254_s24 = scalar_lea.vmem %s18_s16, 256  ;;  %p259_p4 = scmp.lt.s32.totalorder %s18_s16, %s18_s16 }
   0xa   :  { %p255_p3 = scmp.ne.s32.totalorder %s18_s16, %s254_s24  ;;  %p260_p5 = scmp.lt.s32.totalorder %s254_s24, %s254_s24 }
   0xc   :  { %p261_p6 = por %p260_p5, %p259_p4 }
   0xe   :  { %p262_p7 = pnand %p261_p6, %p255_p3 }
  0x10   :  { %265 = shalt.err (!%p262_p7)
}
  0x11   :  { %s317_s25 = smov 128   ;;  %s318_s26 = smov 8  }
  0x12   :  { %23 = dma.hbm_to_vmem [thread:$0]  %s405_s0, 256, %s18_s16, [#allocation4], %s317_s25, %s317_s25, %s318_s26  }
  0x13   :  { %s319_s29 = smov [#allocation6]   ;;  %s266_s7 = scalar_lea.hbm %s408_s3, 1024 }
  0x14   :  { %s33_s30 = sshll.u32 %s319_s29, 4  ;;  %p267_p8 = scmp.ne.s32.totalorder %s408_s3, %s266_s7  ;;  %s34_s30 = int_to_ptr.vmem [resolvable:$true] %s33_s30 }
  0x15   :  { %p270_p9 = scmp.lt.u32.totalorder %s266_s7, %s408_s3 }
  0x17   :  { %p272_p10 = pnand %p270_p9, %p267_p8 }
  0x19   :  { %275 = shalt.err (!%p272_p10)
}
  0x1a   :  { %s276_s12 = scalar_lea.vmem %s34_s30, 1024  ;;  %p281_p12 = scmp.lt.s32.totalorder %s34_s30, %s34_s30 }
  0x1b   :  { %p277_p11 = scmp.ne.s32.totalorder %s34_s30, %s276_s12  ;;  %p282_p13 = scmp.lt.s32.totalorder %s276_s12, %s276_s12 }
  0x1d   :  { %p283_p0 = por %p282_p13, %p281_p12 }
  0x1f   :  { %p284_p1 = pnand %p283_p0, %p277_p11 }
  0x21   :  { %287 = shalt.err (!%p284_p1)
}
  0x22   :  { %s320_s0 = smov 256   ;;  %s321_s13 = smov 16  }
  0x23   :  { %39 = dma.hbm_to_vmem [thread:$0]  %s408_s3, 1024, %s34_s30, [#allocation7], %s320_s0, %s320_s0, %s321_s13  }
  0x24   :  { %310 = dma.done.wait [#allocation4], 256  }
  0x25   :  { %311 = vsyncadd [#allocation4], 4294967040 }
  0x26   :  { %312 = dma.done.wait [#allocation7], 1024  }
  0x27   :  { %313 = vsyncadd [#allocation7], 4294966272  ;;  %vm52_vm0 = vcmask 261120   ;;  %v50_v0 = vld [vmem:[#allocation3] sm:$0xff]  ;;  %v51_v1 = vld [vmem:[#allocation3 + $0x8] sm:$0xff]  ;;  %v322_v26 = vmov 0.0  }
  0x28   :  { %v53_v2 = vsel %vm52_vm0, %v50_v0, 0.0  ;;  %v56_v3 = vsel %vm52_vm0, %v51_v1, 0.0  ;;  %v103_v14 = vld [vmem:[#allocation6 + $0x8] sm:$0xff]  ;;  %v105_v15 = vld [vmem:[#allocation6 + $0x18] sm:$0xff]  ;;  %v102_v17 = vld [vmem:[#allocation6] sm:$0xff]  ;;  %181 = vmatprep.mubr.f32.mxu0 %v322_v26  ;;  %187 = vmatprep.mubr.f32.mxu1 %v322_v26 }
  0x29   :  { %54 = vadd.xlane.f32.xlu0 %v53_v2  ;;  %v220_v16 = vpack.c.bf16 %v105_v15, %v103_v14  ;;  %v104_v18 = vld [vmem:[#allocation6 + $0x10] sm:$0xff]  ;;  %v107_v20 = vld [vmem:[#allocation6 + $0x28] sm:$0xff]  ;;  %v109_v21 = vld [vmem:[#allocation6 + $0x38] sm:$0xff] }
  0x2a   :  { %v222_v19 = vpack.c.bf16 %v104_v18, %v102_v17  ;;  %v224_v22 = vpack.c.bf16 %v109_v21, %v107_v20  ;;  %v106_v23 = vld [vmem:[#allocation6 + $0x20] sm:$0xff]  ;;  %v108_v24 = vld [vmem:[#allocation6 + $0x30] sm:$0xff] }
  0x2b   :  { %221 = vmatprep.subr.bf16.mxu0 %v220_v16  ;;  %228 = vmatprep.subr.bf16.mxu1 %v220_v16  ;;  %v226_v25 = vpack.c.bf16 %v108_v24, %v106_v23  ;;  %v216_v34 = vld [vmem:[%s406_s1] ss:$0 sm:$0xff]  ;;  %s323_s1 = smov [#allocation8]  }
  0x2c   :  { %223 = vmatpush1.bf16.msra.mxu0 %v222_v19  ;;  %230 = vmatpush1.bf16.msra.mxu1 %v222_v19  ;;  %v217_v36 = vld [vmem:[%s407_s2] ss:$0 sm:$0xff]  ;;  %s203_s2 = sshll.u32 %s323_s1, 4  ;;  %s204_s2 = int_to_ptr.vmem [resolvable:$true] %s203_s2 }
  0x2d   :  { %57 = vadd.xlane.f32.xlu0 %v56_v3  ;;  %225 = vmatprep.subr.bf16.mxu0 %v224_v22  ;;  %s288_s19 = scalar_lea.vmem %s204_s2, 512  ;;  %p293_p3 = scmp.lt.s32.totalorder %s204_s2, %s204_s2 }
  0x2e   :  { %229 = vmatprep.subr.bf16.mxu1 %v224_v22  ;;  %p289_p2 = scmp.ne.s32.totalorder %s204_s2, %s288_s19  ;;  %p294_p4 = scmp.lt.s32.totalorder %s288_s19, %s288_s19 }
  0x30   :  { %227 = vmatpush1.bf16.msra.mxu0 %v226_v25  ;;  %231 = vmatpush1.bf16.msra.mxu1 %v226_v25  ;;  %p295_p5 = por %p294_p4, %p293_p3 }
  0x32   :  { %p296_p6 = pnand %p295_p5, %p289_p2 }
  0xb6   :  { %v55_v4 = vpop.xlane.xlu0 %54 }
  0xb7   :  { %v60_v5 = vmul.f32 0.03125, %v55_v4 }
  0xb9   :  { %v62_v6 = vsub.f32 %v50_v0, %v60_v5 }
  0xba   :  { %v58_v7 = vpop.xlane.xlu0 %57 }
  0xbb   :  { %v61_v8 = vmul.f32 0.03125, %v58_v7  ;;  %v64_v9 = vmul.f32 %v62_v6, %v62_v6 }
  0xbd   :  { %v63_v10 = vsub.f32 %v51_v1, %v61_v8  ;;  %v66_v11 = vsel %vm52_vm0, %v64_v9, 0.0 }
  0xbe   :  { %67 = vadd.xlane.f32.xlu1 %v66_v11 }
  0xbf   :  { %v65_v12 = vmul.f32 %v63_v10, %v63_v10 }
  0xc1   :  { %v69_v13 = vsel %vm52_vm0, %v65_v12, 0.0 }
  0xc2   :  { %70 = vadd.xlane.f32.xlu1 %v69_v13 }
 0x14b   :  { %v68_v27 = vpop.xlane.xlu1 %67 }
 0x14c   :  { %v72_v28 = vmul.f32 0.03125, %v68_v27 }
 0x14e   :  { %v74_v29 = vadd.f32 1e-05, %v72_v28 }
 0x14f   :  { %v71_v30 = vpop.xlane.xlu1 %70 }
 0x150   :  { %240 = vrsqrt.f32 %v74_v29  ;;  %v73_v31 = vmul.f32 0.03125, %v71_v30 }
 0x152   :  { %v75_v32 = vadd.f32 1e-05, %v73_v31 }
 0x154   :  { %242 = vrsqrt.f32 %v75_v32 }
 0x15a   :  { %v241_v33 = vpop.eup %240 }
 0x15b   :  { %v78_v35 = vmul.f32 %v241_v33, %v62_v6 }
 0x15d   :  { %v87_v37 = vmul.f32 %v216_v34, %v78_v35 }
 0x15e   :  { %v243_v38 = vpop.eup %242 }
 0x15f   :  { %v96_v39 = vadd.f32 %v217_v36, %v87_v37  ;;  %v79_v40 = vmul.f32 %v243_v38, %v63_v10 }
 0x161   :  { %98 = vst.msk [vmem:[#allocation2] sm:$0xff] %vm52_vm0, %v96_v39  ;;  %v88_v41 = vmul.f32 %v216_v34, %v79_v40 }
 0x163   :  { %v97_v42 = vadd.f32 %v217_v36, %v88_v41 }
 0x165   :  { %99 = vst.msk [vmem:[#allocation2 + $0x8] sm:$0xff] %vm52_vm0, %v97_v42 }
 0x168   :  { %v100_v43 = vld [vmem:[#allocation2] sm:$0xff] }
 0x169   :  { %218 = vmatmul.mubr.msk.f32.vlgmr.msra.gmra.mrb[0].mxu0 %vm52_vm0, %v100_v43 }
 0x16c   :  { %v101_v44 = vld [vmem:[#allocation2 + $0x8] sm:$0xff] }
 0x16d   :  { %219 = vmatmul.mubr.msk.f32.vlgmr.msra.gmra.mrb[0].mxu1 %vm52_vm0, %v101_v44 }
 0x23c   :  { %v183_v45 = vpop.f32.mrb[0].mxu0 }
 0x23d   :  { %194 = vst [vmem:[#allocation8] sm:$0xff] %v183_v45  ;;  %v185_v46 = vpop.f32.mrb[1].mxu0 }
 0x23e   :  { %195 = vst [vmem:[#allocation8 + $0x8] sm:$0xff] %v185_v46 }
 0x240   :  { %v189_v47 = vpop.f32.mrb[0].mxu1 }
 0x241   :  { %196 = vst [vmem:[#allocation8 + $0x10] sm:$0xff] %v189_v47  ;;  %v191_v48 = vpop.f32.mrb[1].mxu1 }
 0x242   :  { %197 = vst [vmem:[#allocation8 + $0x18] sm:$0xff] %v191_v48 }
 0x243   :  { %299 = shalt.err (!%p296_p6)
}
 0x244   :  { %s300_s22 = scalar_lea.hbm %s409_s4, 512 }
 0x245   :  { %p301_p7 = scmp.ne.s32.totalorder %s409_s4, %s300_s22  ;;  %p304_p8 = scmp.lt.u32.totalorder %s300_s22, %s409_s4 }
 0x247   :  { %p306_p9 = pnand %p304_p8, %p301_p7 }
 0x249   :  { %309 = shalt.err (!%p306_p9)
}
 0x24a   :  { %209 = dma.vmem_to_hbm [thread:$0]  %s204_s2, 512, %s409_s4, [#allocation5], %s320_s0, %s320_s0, %s321_s13  }
 0x24b   :  { %314 = dma.done.wait [#allocation5], 512  }
 0x24c   :  { %315 = vsyncadd [#allocation5], 4294966784 }
 0x24d   :  { %213 = vsyncpa [#allocation4], 1 }
 0x24e   :  { %214 = vsyncpa [#allocation7], 1 }
 0x24f   :  { %215 = vsyncpa [#allocation5], 1 }

</bundles_post_ra>
